<compile_context>
chip_gen: v7x
topology: tpu7x:2x2x1
jax: 0.10.0
libtpu: 0.0.40
codegen_flags: <defaults>
</compile_context>

<pallas_src>
import jax
import jax.numpy as jnp
from jax import lax
from jax.experimental import pallas as pl
from jax.experimental.pallas import tpu as pltpu


def _prj_kernel(x_ref, p_ref, a_ref, acc_ref):
    # x_ref  : (BCp, N_img)  bf16, resident across the whole grid
    # p_ref  : (BCp, tk)     f32 sinogram tile, streamed
    # a_ref  : (tk,  N_img)  bf16 system-matrix strip, streamed once
    # acc_ref: (BCp, N_img)  f32 OUTPUT block = partial back-projection for
    #          split s; same block index for every k -> resident accumulator.
    k = pl.program_id(1)

    @pl.when(k == 0)
    def _():
        acc_ref[...] = jnp.zeros_like(acc_ref)

    a = a_ref[...]                                           # bf16 strip

    # temp_k = x @ A_k^T - p_k   (bf16 MXU inputs, f32 accumulation)
    temp = lax.dot_general(
        x_ref[...], a, (((1,), (1,)), ((), ())),
        preferred_element_type=jnp.float32) - p_ref[...]

    # acc += temp_k @ A_k        (adjoint / back projection)
    acc_ref[...] += jnp.dot(temp.astype(jnp.bfloat16), a,
                            preferred_element_type=jnp.float32)


def _round_up(x, m):
    return ((x + m - 1) // m) * m


def _pad2(x, rows, cols):
    r, c = x.shape
    if r == rows and c == cols:
        return x
    return jnp.pad(x, ((0, rows - r), (0, cols - c)))


def prj_module_forward(input_data, proj, weight, sys_matrix, *, tk=None):
    """input_data: (B, C, H, W)  proj: (B, C, Hs, Ws)  weight: scalar
       sys_matrix: (Hs*Ws, H*W)  -> returns (B, C, H, W)"""
    b, c, h, w = input_data.shape
    bs, cs, hs, ws = proj.shape
    assert (b, c) == (bs, cs)
    bc = b * c
    n_img = h * w
    n_sino = hs * ws
    assert sys_matrix.shape == (n_sino, n_img)

    # ---- TPU granules: rows -> 8 sublanes, lanes -> multiples of 128 -------
    bc_p = _round_up(bc, 8)
    n_img_p = _round_up(n_img, 128)

    # ---- generation-aware VMEM budget (64 MiB on v7x, 128 MiB on v5e/v6e) --
    try:
        vmem_phys = int(pltpu.get_tpu_info().vmem_capacity_bytes)
    except Exception:
        vmem_phys = 64 * 2**20          # conservative fallback (v7x-sized)
    vmem_budget = int(vmem_phys * 0.80)  # headroom for compiler scratch

    # resident blocks (counted double-buffered to stay conservative):
    #   x (bf16) + output partial accumulator (f32)
    resident = 2 * bc_p * n_img_p * 2 + 2 * bc_p * n_img_p * 4
    # streamed bytes per sinogram row: double-buffered A strip (bf16) + p (f32)
    stream_per_row = 2 * n_img_p * 2 + 2 * bc_p * 4

    if tk is None:
        tk = (max(0, vmem_budget - resident) // stream_per_row) // 128 * 128
    # TODO(synk): for images so large that tk would need to drop below 128,
    # pass `proj` transposed so tk becomes a sublane dim (multiple of 8).
    tk = max(128, (int(tk) // 128) * 128)
    tk = min(tk, _round_up(n_sino, 128))

    # ---- split the sinogram reduction across (up to) 2 TensorCores ---------
    n_steps_total = -(-n_sino // tk)
    num_splits = 2 if n_steps_total >= 2 else 1
    steps_per_split = -(-n_steps_total // num_splits)
    n_sino_p = num_splits * steps_per_split * tk

    # ---- host-side layout: flatten NCHW, zero-pad (exact: zero A rows and
    #      zero p entries contribute nothing to the accumulator) -------------
    x_f32 = input_data.reshape(bc, n_img).astype(jnp.float32)
    x_bf = _pad2(x_f32.astype(jnp.bfloat16), bc_p, n_img_p)      # cast once
    p = _pad2(proj.reshape(bc, n_sino).astype(jnp.float32), bc_p, n_sino_p)
    a = _pad2(sys_matrix.astype(jnp.bfloat16), n_sino_p, n_img_p)

    flops = int(4 * bc_p * n_sino_p * n_img_p)                   # two matmuls
    bytes_accessed = int(a.size * a.dtype.itemsize
                         + x_bf.size * x_bf.dtype.itemsize
                         + p.size * 4
                         + num_splits * bc_p * n_img_p * 4)

    vmem_need = resident + stream_per_row * tk
    vmem_limit = int(min(vmem_budget, max(32 * 2**20, int(vmem_need * 1.25))))

    partials = pl.pallas_call(
        _prj_kernel,
        out_shape=jax.ShapeDtypeStruct((num_splits * bc_p, n_img_p),
                                       jnp.float32),
        grid_spec=pltpu.PrefetchScalarGridSpec(
            num_scalar_prefetch=0,
            grid=(num_splits, steps_per_split),
            in_specs=[
                # x: resident (constant block index)
                pl.BlockSpec((bc_p, n_img_p), lambda s, k: (0, 0)),
                # sinogram tile for this (split, step)
                pl.BlockSpec((bc_p, tk),
                             lambda s, k: (0, s * steps_per_split + k)),
                # system-matrix strip for this (split, step)
                pl.BlockSpec((tk, n_img_p),
                             lambda s, k: (s * steps_per_split + k, 0)),
            ],
            # per-split partial accumulator, resident across k
            out_specs=pl.BlockSpec((bc_p, n_img_p), lambda s, k: (s, 0)),
        ),
        compiler_params=pltpu.CompilerParams(
            dimension_semantics=("parallel", "arbitrary"),
            vmem_limit_bytes=vmem_limit,
        ),
        cost_estimate=pl.CostEstimate(
            flops=flops, transcendentals=0, bytes_accessed=bytes_accessed),
    )(x_bf, p, a)

    # ---- XLA epilogue: sum partials, out = x - weight * inter --------------
    inter = partials.reshape(num_splits, bc_p, n_img_p).sum(axis=0)
    inter = inter[:bc, :n_img]
    out = x_f32 - jnp.asarray(weight, jnp.float32) * inter
    return out.astype(input_data.dtype).reshape(b, c, h, w)


def reference_forward(input_data, proj, weight, sys_matrix):
    # Same bf16-A / bf16-x / f32-accumulate numerics as the kernel.
    b, c, h, w = input_data.shape
    x = input_data.reshape(b * c, h * w).astype(jnp.float32)
    p = proj.reshape(b * c, -1).astype(jnp.float32)
    a = sys_matrix.astype(jnp.bfloat16)
    temp = jnp.dot(x.astype(jnp.bfloat16), a.T,
                   preferred_element_type=jnp.float32) - p
    inter = jnp.dot(temp.astype(jnp.bfloat16), a,
                    preferred_element_type=jnp.float32)
    return (x - weight * inter).reshape(input_data.shape)


if __name__ == "__main__":
    key = jax.random.PRNGKey(0)
    k1, k2, k3 = jax.random.split(key, 3)

    # small shapes: image 2x1x16x16, sinogram 2x1x16x32 (16 views, 32 dets)
    B, C, H, W = 2, 1, 16, 16
    VIEWS, DETS = 16, 32
    N_IMG, N_SINO = H * W, VIEWS * DETS

    input_data = jax.random.normal(k1, (B, C, H, W), dtype=jnp.float32)
    proj = jax.random.normal(k2, (B, C, VIEWS, DETS), dtype=jnp.float32)

    # Deterministic synthetic CT system matrix (stands in for the geometry
    # defined by `options` + ctlib's ray tracer).  Sparse-ish, non-negative.
    a_raw = jax.random.uniform(k3, (N_SINO, N_IMG), dtype=jnp.float32)
    sys_matrix = jnp.where(a_raw > 0.9, a_raw, 0.0) * 0.1

    weight = jnp.float32(0.01)
    # TODO(synk): `options` (fan-beam geometry params) is consumed only by
    # ctlib's ray tracer; it is absorbed into the synthetic system matrix here.

    # tk=128 forces a (2 splits x 2 steps) grid at this toy size to exercise
    # both the k-loop accumulation and the parallel split; production sizes
    # get the VMEM-budget-derived tile automatically.
    out = prj_module_forward(input_data, proj, weight, sys_matrix, tk=128)
    out = jax.block_until_ready(out)

    ref = reference_forward(input_data, proj, weight, sys_matrix)
    assert out.shape == (B, C, H, W)
    assert jnp.allclose(out, ref, atol=1e-2, rtol=1e-2), float(
        jnp.max(jnp.abs(out - ref)))

    print("KERNEL_OK")
</pallas_src>

<mosaic_0001>
module attributes {stable_mosaic.version = 11 : i64} {
  func.func @_prj_kernel(%arg0: i32, %arg1: i32, %arg2: memref<8x256xbf16, #tpu.memory_space<vmem>>, %arg3: memref<8x128xf32, #tpu.memory_space<vmem>>, %arg4: memref<128x256xbf16, #tpu.memory_space<vmem>>, %arg5: memref<8x256xf32, #tpu.memory_space<vmem>>) attributes {dimension_semantics = [#tpu.dimension_semantics<parallel>, #tpu.dimension_semantics<arbitrary>], iteration_bounds = array<i64: 2, 2>, scalar_prefetch = 0 : i64, scratch_operands = 0 : i64, tpu.core_type = #tpu.core_type<tc>, window_params = [{pipeline_mode = #tpu.pipeline_mode<synchronous>, transform_indices = @transform_0, window_bounds = array<i64: 8, 256>}, {transform_indices = @transform_1, window_bounds = array<i64: 8, 128>}, {transform_indices = @transform_2, window_bounds = array<i64: 128, 256>}, {transform_indices = @transform_3, window_bounds = array<i64: 8, 256>}]} {
    %c0_i32 = arith.constant 0 : i32
    %0 = arith.cmpi eq, %arg1, %c0_i32 : i32
    %1 = arith.extui %0 : i1 to i32
    %c0_i32_0 = arith.constant 0 : i32
    %2 = arith.cmpi ne, %1, %c0_i32_0 : i32
    scf.if %2 {
      %cst_11 = arith.constant 0.000000e+00 : f32
      %13 = vector.broadcast %cst_11 : f32 to vector<8x256xf32>
      %c0_12 = arith.constant 0 : index
      %c0_13 = arith.constant 0 : index
      %14 = vector.load %arg5[%c0_12, %c0_13] : memref<8x256xf32, #tpu.memory_space<vmem>>, vector<8x256xf32>
      tpu.vector_store %arg5[%c0_12, %c0_13], %13 {strides = array<i32>} : memref<8x256xf32, #tpu.memory_space<vmem>>, vector<8x256xf32>,
    } else {
    }
    %c0 = arith.constant 0 : index
    %c0_1 = arith.constant 0 : index
    %3 = vector.load %arg4[%c0, %c0_1] : memref<128x256xbf16, #tpu.memory_space<vmem>>, vector<128x256xbf16>
    %c0_2 = arith.constant 0 : index
    %c0_3 = arith.constant 0 : index
    %4 = vector.load %arg2[%c0_2, %c0_3] : memref<8x256xbf16, #tpu.memory_space<vmem>>, vector<8x256xbf16>
    %cst = arith.constant dense<0.000000e+00> : vector<8x128xf32>
    %5 = tpu.matmul %4, %3, %cst {dimension_numbers = #tpu.dot_dimension_numbers<[1], [1], [0], [0], [0, 0, 1, 0], [], []>} : vector<8x256xbf16>, vector<128x256xbf16>, vector<8x128xf32> -> vector<8x128xf32>
    %c0_4 = arith.constant 0 : index
    %c0_5 = arith.constant 0 : index
    %6 = vector.load %arg3[%c0_4, %c0_5] : memref<8x128xf32, #tpu.memory_space<vmem>>, vector<8x128xf32>
    %7 = arith.subf %5, %6 : vector<8x128xf32>
    %c0_6 = arith.constant 0 : index
    %c0_7 = arith.constant 0 : index
    %8 = vector.load %arg5[%c0_6, %c0_7] : memref<8x256xf32, #tpu.memory_space<vmem>>, vector<8x256xf32>
    %9 = arith.truncf %7 : vector<8x128xf32> to vector<8x128xbf16>
    %cst_8 = arith.constant dense<0.000000e+00> : vector<8x256xf32>
    %10 = tpu.matmul %9, %3, %cst_8 {dimension_numbers = #tpu.dot_dimension_numbers<[1], [0], [0], [1], [0, 0, 1, 1], [], []>} : vector<8x128xbf16>, vector<128x256xbf16>, vector<8x256xf32> -> vector<8x256xf32>
    %11 = arith.addf %8, %10 : vector<8x256xf32>
    %c0_9 = arith.constant 0 : index
    %c0_10 = arith.constant 0 : index
    %12 = vector.load %arg5[%c0_9, %c0_10] : memref<8x256xf32, #tpu.memory_space<vmem>>, vector<8x256xf32>
    tpu.vector_store %arg5[%c0_9, %c0_10], %11 {strides = array<i32>} : memref<8x256xf32, #tpu.memory_space<vmem>>, vector<8x256xf32>,
    return
  }
  func.func @transform_0(%arg0: i32, %arg1: i32) -> (i32, i32) {
    %c0_i32 = arith.constant 0 : i32
    %c0_i32_0 = arith.constant 0 : i32
    %c0_i32_1 = arith.constant 0 : i32
    return %c0_i32, %c0_i32_0 : i32, i32
  }
  func.func @transform_1(%arg0: i32, %arg1: i32) -> (i32, i32) {
    %c2_i32 = arith.constant 2 : i32
    %0 = arith.muli %arg0, %c2_i32 : i32
    %1 = arith.addi %0, %arg1 : i32
    %c0_i32 = arith.constant 0 : i32
    %c0_i32_0 = arith.constant 0 : i32
    return %c0_i32, %1 : i32, i32
  }
  func.func @transform_2(%arg0: i32, %arg1: i32) -> (i32, i32) {
    %c2_i32 = arith.constant 2 : i32
    %0 = arith.muli %arg0, %c2_i32 : i32
    %1 = arith.addi %0, %arg1 : i32
    %c0_i32 = arith.constant 0 : i32
    %c0_i32_0 = arith.constant 0 : i32
    return %1, %c0_i32 : i32, i32
  }
  func.func @transform_3(%arg0: i32, %arg1: i32) -> (i32, i32) {
    %c0_i32 = arith.constant 0 : i32
    %c0_i32_0 = arith.constant 0 : i32
    return %arg0, %c0_i32 : i32, i32
  }
}

</mosaic_0001>

<bundles_post_ra>
// kernel: tpu_custom_call.1
= control target key start
LH: loop header
LB: loop body
LE: loop exit
PB: predicated region body
PF: predicated region fallthrough
CT: control target
= control target key end

     0   :  { %s1392_s0 = inlined_call_operand.hbm [shape: bf16[8,256], index: 0, kind: input, shape index: {}]   ;;  %s1393_s1 = inlined_call_operand.hbm [shape: f32[8,512], index: 1, kind: input, shape index: {}]   ;;  %s1394_s2 = inlined_call_operand.hbm [shape: bf16[512,256], index: 2, kind: input, shape index: {}]   ;;  %s1395_s3 = inlined_call_operand.hbm [shape: f32[16,256], index: 3, kind: output, shape index: {}]  }
   0x1   :  { %1405 = sst [smem:[#allocation17_spill]] %s1393_s1 }
   0x2   :  { %1406 = sst [smem:[#allocation18_spill]] %s1394_s2 }
   0x3   :  { %1407 = sst [smem:[#allocation19_spill]] %s1395_s3 }
   0x4   :  { %8 = vsyncpa [#allocation3], 0 }
   0x5   :  { %9 = vsyncpa [#allocation6], 0 }
   0x6   :  { %11 = vsyncpa [#allocation6 + $0x1], 0 }
   0x7   :  { %12 = vsyncpa [#allocation4], 0 }
   0x8   :  { %14 = vsyncpa [#allocation4 + $0x1], 0  ;;  %s1040_s12 = smov 0   ;;  %s1042_s13 = smov 0  }
   0x9   :  { %s1044_s14 = smov 0   ;;  %s1046_s15 = smov 0  }
   0xa   :  { %s1048_s16 = smov 0   ;;  %s1050_s17 = smov 0  }
   0xb   :  { %s1052_s18 = smov 0   ;;  %s1054_s19 = smov 0  }
   0xc   :  { %s1056_s20 = smov 0   ;;  %s1058_s21 = smov 0  }
   0xd   :  { %s1060_s22 = smov 0  }
   0xe LB: > { %1408 = sst [smem:[#allocation12_spill]] %s998_s19  ;;  %s29_s23 = sadd.s32 1, %s1002_s20  ;;  %s1010_s22 = sphi %s1060_s22, %s20_s22   ;;  %s1006_s21 = sphi %s1058_s21, %s1433_s21   ;;  %s1002_s20 = sphi %s1056_s20, %s1440_s20   ;;  %s998_s19 = sphi %s1054_s19, %s1431_s19   ;;  %s994_s18 = sphi %s1052_s18, %s1430_s18   ;;  %s990_s17 = sphi %s1050_s17, %s1439_s17   ;;  %s986_s16 = sphi %s1048_s16, %s1438_s16   ;;  %s982_s15 = sphi %s1046_s15, %s1437_s15   ;;  %s978_s14 = sphi %s1044_s14, %s1436_s14   ;;  %s974_s13 = sphi %s1042_s13, %s1435_s13   ;;  %s970_s12 = sphi %s1040_s12, %s1434_s12  }
   0xf   : > { %1409 = sst [smem:[#allocation13_spill]] %s1002_s20  ;;  %s32_s24 = sadd.s32 1, %s1006_s21 }
  0x10   : > { %1410 = sst [smem:[#allocation14_spill]] %s1006_s21  ;;  %p30_p0 = scmp.ge.s32.totalorder %s29_s23, 2 }
  0x11   : > { %s601_s25 = sshll.u32 %s1006_s21, 1  ;;  %p71_p1 = scmp.ne.s32.totalorder %s990_s17, %s986_s16 }
  0x12   : > { %s1099_s26 = sadd.s32 %s1002_s20, %s601_s25  ;;  %s1442_s23 = smov (%p30_p0, %s29_s23), 0 }
  0x13   : > { %1411 = sst [smem:[#allocation15_spill]] %s1442_s23  ;;  %s1444_s24 = smov (!%p30_p0, %s32_s24), %s1006_s21 }
  0x14   : > { %p72_p2 = scmp.eq.s32.totalorder %s1010_s22, 0  ;;  %p34_p3 = scmp.ge.s32.totalorder %s1444_s24, 2 }
  0x15   : > { %s64_s27 = sadd.s32 1, %s990_s17  ;;  %p674_p5 = scmp.lt.s32.totalorder %s1010_s22, 4 }
  0x16   : > { %p1108_p4 = por %p72_p2, %p71_p1  ;;  %s1446_s24 = smov (%p34_p3, %s1444_s24), 0 }
  0x17   : > { %1413 = sst [smem:[#allocation16_spill]] %s1446_s24  ;;  %s168_s29 = sand.u32 1, %s1010_s22  }
  0x18   : > { %s602_s30 = sshll.u32 %s1446_s24, 1  ;;  %s170_s4 = sand.u32 1, %s990_s17  }
  0x19   : > { %s60_s5 = sadd.s32 %s602_s30, %s1442_s23  ;;  %s117_s6 = ssub.s32 %s1006_s21, %s1446_s24 }
  0x1a   : > { %s61_s7 = ssub.s32 %s1099_s26, %s60_s5  ;;  %s608_s8 = sshll.u32 %s170_s4, 3 }
  0x1b   : > { %p62_p6 = scmp.eq.s32.totalorder %s61_s7, 0  ;;  %s610_s9 = sshll.u32 %s1099_s26, 7 }
  0x1c   : > { %s1414_s1 = sld [smem:[#allocation17_spill]]  ;;  %s172_s3 = scalar_lea.vmem [#allocation5], %s608_s8 }
  0x1d   : > { %s1124_s10 = scalar_select %p62_p6, %s990_s17, %s64_s27  }
  0x1e   : > { %s181_s19 = sshll.u32 %s172_s3, 4  ;;  %p1137_p7 = pnand %p674_p5, %p1108_p4  ;;  %s1131_s19 = int_to_ptr.vmem [resolvable:$true] %s181_s19 }
  0x1f   : > { %s1141_s27 = sshll.u32 %s170_s4, 7  ;;  %s646_s5 = sshll.u32 %s1099_s26, 11 }
  0x20   : > { %s1144_s7 = scalar_lea.sflag [#allocation6], %s168_s29  ;;  %p798_p9 = pneg %p1137_p7 }
  0x22   : > { %s1129_s20 = scalar_lea.hbm %s1414_s1, %s610_s9  ;;  %s801_s8 = scalar_lea.hbm %s1414_s1, 512 }
  0x23   : > { %s796_s9 = scalar_lea.hbm %s1129_s20, 128  ;;  %p802_p12 = scmp.lt.u32.totalorder %s1129_s20, %s1414_s1 }
  0x24   : > { %p797_p8 = scmp.ne.s32.totalorder %s1129_s20, %s796_s9  ;;  %p803_p13 = scmp.lt.u32.totalorder %s801_s8, %s796_s9 }
  0x25   : > { %p805_p1 = scmp.lt.u32.totalorder %s796_s9, %s1129_s20 }
  0x26   : > { %p799_p10 = pnand %p798_p9, %p797_p8  ;;  %p804_p0 = por %p803_p13, %p802_p12 }
  0x28   : > { %p800_p11 = pneg %p799_p10  ;;  %p806_p2 = por %p805_p1, %p804_p0 }
  0x2a   : > { %p807_p3 = pnand %p806_p2, %p800_p11 }
  0x2c   : > { %810 = shalt.err (!%p807_p3)
}
  0x2d   : > { %s811_s29 = scalar_lea.vmem %s1131_s19, 128  ;;  %s1012_s4 = smov [#allocation5]  }
  0x2e   : > { %p812_p4 = scmp.ne.s32.totalorder %s1131_s19, %s811_s29  ;;  %s816_s3 = sshll.u32 %s1012_s4, 4  ;;  %s817_s3 = int_to_ptr.vmem [resolvable:$false] %s816_s3 }
  0x2f   : > { %s818_s28 = scalar_lea.vmem %s817_s3, 256  ;;  %p819_p8 = scmp.lt.s32.totalorder %s1131_s19, %s817_s3 }
  0x30   : > { %p814_p5 = pnand %p812_p4, %p798_p9  ;;  %p820_p10 = scmp.lt.s32.totalorder %s818_s28, %s811_s29 }
  0x32   : > { %p815_p6 = pneg %p814_p5  ;;  %p821_p12 = por %p820_p10, %p819_p8 }
  0x34   : > { %p822_p13 = pnand %p821_p12, %p815_p6 }
  0x36   : > { %825 = shalt.err (!%p822_p13)
}
  0x37   : > { %665 = dma.hbm_to_vmem [thread:$0]  (!%p1137_p7), %s1129_s20, 128, %s1131_s19, %s1144_s7  }
  0x38   : > { %p118_p11 = scmp.eq.s32.totalorder %s117_s6, 0  ;;  %s1416_s2 = sld [smem:[#allocation18_spill]] }
  0x39   : > { %s192_s25 = scalar_lea.vmem [#allocation7], %s1141_s27  ;;  %s1184_s4 = sadd.s32 4294967295, %s1010_s22  }
  0x3a   : > { %s202_s29 = sshll.u32 %s192_s25, 4  ;;  %s600_s3 = sadd.s32 4294967294, %s1010_s22   ;;  %s1219_s29 = int_to_ptr.vmem [resolvable:$true] %s202_s29 }
  0x3b   : > { %p77_p0 = scmp.ne.s32.totalorder %s986_s16, %s982_s15  ;;  %p1398_p1 = scmp.eq.s32.totalorder %s1184_s4, 0 }
  0x3c   : > { %s120_s19 = sadd.s32 1, %s978_s14  ;;  %p130_p3 = scmp.ne.s32.totalorder %s978_s14, %s974_s13 }
  0x3d   : > { %s1192_s20 = scalar_select %p118_p11, %s978_s14, %s120_s19  }
  0x3e   : > { %s1180_s11 = scalar_lea.hbm %s1416_s2, %s646_s5  ;;  %p1196_p2 = por %p1398_p1, %p77_p0 }
  0x3f   : > { %p131_p4 = scmp.eq.s32.totalorder %s1184_s4, 3  ;;  %p136_p5 = scmp.ne.s32.totalorder %s974_s13, %s970_s12 }
  0x40   : > { %s1417_s26 = scalar_select %p1196_p2, 1, 0 }
  0x41   : > { %p137_p6 = scmp.eq.s32.totalorder %s600_s3, 3  ;;  %p605_p8 = scmp.ge.s32.totalorder %s1010_s22, 1 }
  0x42   : > { %p1206_p10 = por %p131_p4, %p130_p3  ;;  %p144_p12 = scmp.lt.s32.totalorder %s1010_s22, 5 }
  0x43   : > { %p1211_p13 = por %p137_p6, %p136_p5  ;;  %s1013_s5 = smov [#allocation2]  }
  0x44   : > { %s1418_s15 = scalar_select %p1206_p10, 1, 0 }
  0x45   : > { %s1419_s6 = scalar_select %p1211_p13, 1, 0 }
  0x46   : > { %p1215_p11 = pnand %p605_p8, %p144_p12  ;;  %s157_s28 = sshll.u32 %s1013_s5, 4  ;;  %s1223_s28 = int_to_ptr.vmem [resolvable:$true] %s157_s28 }
  0x47   : > { %s826_s8 = scalar_lea.hbm %s1180_s11, 2048  ;;  %s831_s19 = scalar_lea.hbm %s1416_s2, 8192 }
  0x48   : > { %s1420_s27 = scalar_select %p1215_p11, 1, 0 }
  0x49   : > { %p658_p0 = pneg %p1215_p11  ;;  %p827_p4 = scmp.ne.s32.totalorder %s1180_s11, %s826_s8 }
  0x4a   : > { %p832_p8 = scmp.lt.u32.totalorder %s1180_s11, %s1416_s2  ;;  %p833_p12 = scmp.lt.u32.totalorder %s831_s19, %s826_s8 }
  0x4b   : > { %p1227_p3 = pnand %p658_p0, %p1398_p1  ;;  %p829_p5 = pnand %p827_p4, %p798_p9 }
  0x4c   : > { %p834_p13 = por %p833_p12, %p832_p8  ;;  %p835_p0 = scmp.lt.u32.totalorder %s826_s8, %s1180_s11 }
  0x4d   : > { %p830_p6 = pneg %p829_p5 }
  0x4e   : > { %p836_p1 = por %p835_p0, %p834_p13 }
  0x50   : > { %p837_p10 = pnand %p836_p1, %p830_p6 }
  0x52   : > { %840 = shalt.err (!%p837_p10)
}
  0x53   : > { %s841_s24 = scalar_lea.vmem %s1219_s29, 2048  ;;  %s1014_s25 = smov [#allocation7]  }
  0x54   : > { %p842_p4 = scmp.ne.s32.totalorder %s1219_s29, %s841_s24  ;;  %s846_s3 = sshll.u32 %s1014_s25, 4  ;;  %s847_s3 = int_to_ptr.vmem [resolvable:$false] %s846_s3 }
  0x55   : > { %s848_s1 = scalar_lea.vmem %s847_s3, 4096  ;;  %p849_p11 = scmp.lt.s32.totalorder %s1219_s29, %s847_s3 }
  0x56   : > { %p844_p5 = pnand %p842_p4, %p798_p9  ;;  %p850_p8 = scmp.lt.s32.totalorder %s848_s1, %s841_s24 }
  0x58   : > { %p845_p2 = pneg %p844_p5  ;;  %p851_p12 = por %p850_p8, %p849_p11 }
  0x5a   : > { %p852_p13 = pnand %p851_p12, %p845_p2 }
  0x5c   : > { %855 = shalt.err (!%p852_p13)
}
  0x5d   : > { %s1015_s8 = smov 128   ;;  %s1016_s19 = smov 8  }
  0x5e   : > { %668 = dma.hbm_to_vmem [thread:$0]  (!%p1137_p7), %s1180_s11, 2048, %s1219_s29, %s1144_s7, %s1015_s8, %s1015_s8, %s1016_s19  }
  0x5f   : > { %s856_s25 = scalar_lea.hbm %s1392_s0, 128  ;;  %p858_p1 = pneg %p1227_p3 }
  0x60   : > { %p857_p9 = scmp.ne.s32.totalorder %s1392_s0, %s856_s25  ;;  %p863_p11 = scmp.lt.u32.totalorder %s856_s25, %s1392_s0 }
  0x62   : > { %p859_p2 = pnand %p858_p1, %p857_p9 }
  0x64   : > { %p860_p10 = pneg %p859_p2 }
  0x66   : > { %p865_p6 = pnand %p863_p11, %p860_p10 }
  0x68   : > { %868 = shalt.err (!%p865_p6)
}
  0x69   : > { %s869_s30 = scalar_lea.vmem %s1223_s28, 128  ;;  %p877_p5 = scmp.lt.s32.totalorder %s1223_s28, %s1223_s28 }
  0x6a   : > { %p870_p7 = scmp.ne.s32.totalorder %s1223_s28, %s869_s30  ;;  %p878_p8 = scmp.lt.s32.totalorder %s869_s30, %s869_s30 }
  0x6c   : > { %p872_p0 = pnand %p870_p7, %p858_p1  ;;  %p879_p12 = por %p878_p8, %p877_p5 }
  0x6e   : > { %p873_p4 = pneg %p872_p0 }
  0x70   : > { %p880_p13 = pnand %p879_p12, %p873_p4 }
  0x72   : > { %883 = shalt.err (!%p880_p13)
}
  0x73   : > { %661 = dma.hbm_to_vmem [thread:$0]  (!%p1227_p3), %s1392_s0, 128, %s1223_s28, [#allocation3]  }
  0x74   : > { %p1422_p9 = scmp.ne.s32.totalorder %s1420_s27, 0 }
  0x75   : > { %p1423_p2 = scmp.eq.s32.totalorder (!%p1422_p9), %s1184_s4, 0 }
  0x76   : > { %214 = sbr.rel (%p1422_p9) target bundleno = 652 (0x28c), region = 32 }
  0x7d   : > { %957 = dma.done.wait (%p1423_p2), [#allocation3], 128   ;;  %p1424_p1 = pmov %p1423_p2 }
  0x7e   : > { %s220_s23 = sand.u32 1, %s1184_s4   ;;  %s222_s7 = sand.u32 1, %s986_s16  }
  0x7f   : > { %959 = vsyncadd (%p1424_p1), [#allocation3], 4294967168  ;;  %s1284_s11 = sshll.u32 %s222_s7, 3  ;;  %s221_s29 = scalar_lea.sflag [#allocation6], %s220_s23 }
  0x80   : > { %s224_s9 = scalar_lea.vmem [#allocation5], %s1284_s11  ;;  %p1425_p3 = scmp.ne.s32.totalorder %s1417_s26, 0 }
  0x82   : > { %961 = dma.done.wait (%p1425_p3), %s221_s29, 2176  }
  0x83   : > { %963 = vsyncadd (%p1425_p3), %s221_s29, 4294965120  ;;  %s619_s27 = sshll.u32 %s222_s7, 7  ;;  %s258_s28 = sand.u32 1, %s974_s13  }
  0x84   : > { %s620_s1 = sshll.u32 %s258_s28, 4  ;;  %s1294_s8 = scalar_lea.vmem [#allocation7], %s619_s27 }
  0x85   : > { %s1296_s4 = scalar_lea.vmem [#allocation8], %s620_s1  ;;  %p621_p10 = scmp.ne.s32.totalorder %s994_s18, 0 }
  0x86   : > { %v1017_v0 = vmov (!%p621_p10), 0.0  }
  0x87   : > { %270 = sbr.rel (%p621_p10) target bundleno = 142 (0x8e), region = 48  ;;  %271 = vst [vmem:[%s1296_s4] sm:$0xff] (!%p621_p10), %v1017_v0  ;;  %272 = vst [vmem:[%s1296_s4 + $0x8] sm:$0xff] (!%p621_p10), %v1017_v0 }
  0x8e PF: > { %v770_v1 = vld [vmem:[%s1294_s8 + $0x4] ss:$8 sps:$4 sm:$0xff]   ;;  %v772_v2 = vld [vmem:[%s1294_s8] ss:$8 sps:$4 sm:$0xff]   ;;  %v773_v3 = vld [vmem:[%s1294_s8 + $0x14] ss:$8 sps:$4 sm:$0xff]  }
  0x8f   : > { %377 = vmatprep.subr.bf16.mxu0 %v770_v1  ;;  %422 = vmatprep.subr.bf16.mxu1 %v770_v1  ;;  %v775_v4 = vld [vmem:[%s1294_s8 + $0x10] ss:$8 sps:$4 sm:$0xff]   ;;  %v776_v5 = vld [vmem:[%s1294_s8 + $0x24] ss:$8 sps:$4 sm:$0xff]   ;;  %v778_v6 = vld [vmem:[%s1294_s8 + $0x20] ss:$8 sps:$4 sm:$0xff]  }
  0x90   : > { %378 = vmatpush1.bf16.xpose.msra.mxu0 %v772_v2  ;;  %423 = vmatpush1.bf16.msra.mxu1 %v772_v2  ;;  %v779_v7 = vld [vmem:[%s1294_s8 + $0x34] ss:$8 sps:$4 sm:$0xff]   ;;  %v289_v8 = vld [vmem:[#allocation2] sm:$0xff]  ;;  %v781_v10 = vld [vmem:[%s1294_s8 + $0x30] ss:$8 sps:$4 sm:$0xff]   ;;  %s1426_s18 = sld [smem:[#allocation12_spill]] }
  0x91   : > { %379 = vmatprep.subr.bf16.mxu0 %v773_v3  ;;  %424 = vmatprep.subr.bf16.mxu1 %v773_v3  ;;  %v623_v9 = vcombine.high %v289_v8, %v289_v8  ;;  %v782_v11 = vld [vmem:[%s1294_s8 + $0x44] ss:$8 sps:$4 sm:$0xff]   ;;  %v784_v12 = vld [vmem:[%s1294_s8 + $0x40] ss:$8 sps:$4 sm:$0xff]   ;;  %v785_v13 = vld [vmem:[%s1294_s8 + $0x54] ss:$8 sps:$4 sm:$0xff]   ;;  %v622_v19 = vcombine.low %v289_v8, %v289_v8 }
  0x92   : > { %v787_v14 = vld [vmem:[%s1294_s8 + $0x50] ss:$8 sps:$4 sm:$0xff]   ;;  %v788_v15 = vld [vmem:[%s1294_s8 + $0x64] ss:$8 sps:$4 sm:$0xff]   ;;  %v790_v16 = vld [vmem:[%s1294_s8 + $0x60] ss:$8 sps:$4 sm:$0xff]  }
  0x93   : > { %409 = vmatprep.mubr.bf16.mxu0 %v623_v9  ;;  %v791_v17 = vld [vmem:[%s1294_s8 + $0x74] ss:$8 sps:$4 sm:$0xff]   ;;  %v793_v18 = vld [vmem:[%s1294_s8 + $0x70] ss:$8 sps:$4 sm:$0xff]   ;;  %v1018_v20 = vmov 0   ;;  %s482_s19 = sshll.u32 %s1296_s4, 4  ;;  %s1328_s19 = int_to_ptr.vmem [resolvable:$true] %s482_s19 }
  0x94   : > { %425 = vmatpush1.bf16.msra.mxu1 %v775_v4  ;;  %454 = vmatprep.mubr.bf16.mxu1 %v1018_v20  ;;  %v417_v21 = vld [vmem:[%s224_s9] sm:$0xff]  ;;  %v419_v28 = vld [vmem:[%s1296_s4] sm:$0xff]  ;;  %s1427_s24 = sld [smem:[#allocation19_spill]]  ;;  %s468_s30 = scalar_lea.sflag [#allocation4], %s258_s28 }
  0x95   : > { %426 = vmatprep.subr.bf16.mxu1 %v776_v5  ;;  %v420_v29 = vld [vmem:[%s1296_s4 + $0x8] sm:$0xff]  ;;  %s884_s2 = scalar_lea.vmem %s1328_s19, 256  ;;  %p1428_p6 = scmp.ne.s32.totalorder %s1418_s15, 0 }
  0x96   : > { %s647_s26 = sshll.u32 %s1426_s18, 8  ;;  %p885_p11 = scmp.ne.s32.totalorder %s1328_s19, %s884_s2 }
  0x97   : > { %s1019_s21 = smov [#allocation8]  }
  0x98   : > { %380 = vmatpush1.bf16.xpose.msra.mxu0 %v775_v4  ;;  %427 = vmatpush1.bf16.msra.mxu1 %v778_v6  ;;  %p886_p7 = pnand %p885_p11, %p1428_p6  ;;  %s888_s23 = sshll.u32 %s1019_s21, 4  ;;  %s889_s23 = int_to_ptr.vmem [resolvable:$false] %s888_s23 }
  0x99   : > { %381 = vmatprep.subr.bf16.mxu0 %v776_v5  ;;  %428 = vmatprep.subr.bf16.mxu1 %v779_v7  ;;  %s890_s7 = scalar_lea.vmem %s889_s23, 512  ;;  %p891_p4 = scmp.lt.s32.totalorder %s1328_s19, %s889_s23 }
  0x9a   : > { %s1326_s3 = scalar_lea.hbm %s1427_s24, %s647_s26  ;;  %p887_p0 = pneg %p886_p7 }
  0x9b   : > { %p892_p5 = scmp.lt.s32.totalorder %s890_s7, %s884_s2 }
  0x9c   : > { %429 = vmatpush1.bf16.msra.mxu1 %v781_v10 }
  0x9d   : > { %430 = vmatprep.subr.bf16.mxu1 %v782_v11  ;;  %p893_p8 = por %p892_p5, %p891_p4 }
  0x9f   : > { %p894_p12 = pnand %p893_p8, %p887_p0 }
  0xa0   : > { %382 = vmatpush1.bf16.xpose.msra.mxu0 %v778_v6  ;;  %431 = vmatpush1.bf16.msra.mxu1 %v784_v12 }
  0xa1   : > { %383 = vmatprep.subr.bf16.mxu0 %v779_v7  ;;  %432 = vmatprep.subr.bf16.mxu1 %v785_v13 }
  0xa4   : > { %433 = vmatpush1.bf16.msra.mxu1 %v787_v14 }
  0xa5   : > { %434 = vmatprep.subr.bf16.mxu1 %v788_v15 }
  0xa8   : > { %384 = vmatpush1.bf16.xpose.msra.mxu0 %v781_v10  ;;  %435 = vmatpush1.bf16.msra.mxu1 %v790_v16 }
  0xa9   : > { %385 = vmatprep.subr.bf16.mxu0 %v782_v11  ;;  %436 = vmatprep.subr.bf16.mxu1 %v791_v17 }
  0xac   : > { %437 = vmatpush1.bf16.msra.mxu1 %v793_v18 }
  0xb0   : > { %386 = vmatpush1.bf16.xpose.msra.mxu0 %v784_v12 }
  0xb1   : > { %387 = vmatprep.subr.bf16.mxu0 %v785_v13 }
  0xb8   : > { %388 = vmatpush1.bf16.xpose.msra.mxu0 %v787_v14 }
  0xb9   : > { %389 = vmatprep.subr.bf16.mxu0 %v788_v15 }
  0xc0   : > { %390 = vmatpush1.bf16.xpose.msra.mxu0 %v790_v16 }
  0xc1   : > { %391 = vmatprep.subr.bf16.mxu0 %v791_v17 }
  0xc8   : > { %392 = vmatpush1.bf16.xpose.msra.mxu0 %v793_v18 }
  0xcf   : > { %410 = vmatmul.mubr.bf16.vlgmr.msra.gmra.mrb[0].mxu0 %v622_v19 }
 0x1a2   : > { %v411_v22 = vpop.f32.mrb[0].mxu0 }
 0x1a3   : > { %v418_v23 = vsub.f32 %v411_v22, %v417_v21  ;;  %v413_v24 = vpop.f32.mrb[1].mxu0 }
 0x1a4   : > { %v414_v25 = vpop.f32.mrb[2].mxu0 }
 0x1a5   : > { %v421_v26 = vpack.c.bf16 %v418_v23, %v418_v23  ;;  %v415_v27 = vpop.f32.mrb[3].mxu0 }
 0x1a7   : > { %455 = vmatmul.mubr.bf16.vlgmr.msra.gmra.mrb[0].mxu1 %v421_v26 }
 0x27a   : > { %v456_v30 = vpop.f32.mrb[0].mxu1 }
 0x27b   : > { %v463_v31 = vadd.f32 %v456_v30, %v419_v28  ;;  %v458_v32 = vpop.f32.mrb[1].mxu1 }
 0x27c   : > { %v464_v33 = vadd.f32 %v458_v32, %v420_v29  ;;  %v460_v34 = vpop.f32.mrb[2].mxu1 }
 0x27d   : > { %465 = vst [vmem:[%s1296_s4] sm:$0xff] %v463_v31  ;;  %v461_v35 = vpop.f32.mrb[3].mxu1 }
 0x27e   : > { %466 = vst [vmem:[%s1296_s4 + $0x8] sm:$0xff] %v464_v33 }
 0x27f   : > { %897 = shalt.err (!%p894_p12)
}
 0x280   : > { %s898_s11 = scalar_lea.hbm %s1326_s3, 256  ;;  %s902_s27 = scalar_lea.hbm %s1427_s24, 512 }
 0x281   : > { %p899_p13 = scmp.ne.s32.totalorder %s1326_s3, %s898_s11  ;;  %p903_p1 = scmp.lt.u32.totalorder %s1326_s3, %s1427_s24 }
 0x282   : > { %p904_p3 = scmp.lt.u32.totalorder %s902_s27, %s898_s11  ;;  %p906_p11 = scmp.lt.u32.totalorder %s898_s11, %s1326_s3 }
 0x283   : > { %p900_p9 = pnand %p899_p13, %p1428_p6 }
 0x284   : > { %p905_p10 = por %p904_p3, %p903_p1 }
 0x285   : > { %p901_p2 = pneg %p900_p9 }
 0x286   : > { %p907_p7 = por %p906_p11, %p905_p10 }
 0x288   : > { %p908_p0 = pnand %p907_p7, %p901_p2 }
 0x28a   : > { %911 = shalt.err (!%p908_p0)
}
 0x28b   : > { %656 = dma.vmem_to_hbm [thread:$0]  (%p1428_p6), %s1328_s19, 256, %s1326_s3, %s468_s30  }
 0x28c PF: > { %p676_p4 = scmp.ge.s32.totalorder %s1010_s22, 2  ;;  %s494_s8 = sand.u32 1, %s970_s12  }
 0x28d   : > { %p1429_p5 = scmp.ne.s32.totalorder %s1419_s6, 0  ;;  %s495_s4 = scalar_lea.sflag [#allocation4], %s494_s8 }
 0x28f   : > { %p670_p8 = pnand %p676_p4, %p1429_p5 }
 0x291   : > { %965 = dma.done.wait (!%p670_p8), %s495_s4, 256  }
 0x292   : > { %967 = vsyncadd (!%p670_p8), %s495_s4, 4294967040  ;;  %s20_s22 = sadd.s32 1, %s1010_s22   ;;  %s1430_s18 = sld [smem:[#allocation13_spill]] }
 0x293   : > { %p17_p12 = scmp.ge.s32.totalorder %s20_s22, 6   ;;  %s1431_s19 = sld [smem:[#allocation14_spill]] }
 0x294   : > { %s1432_s26 = sld [smem:[#allocation15_spill]]  ;;  %s1433_s21 = sld [smem:[#allocation16_spill]] }
 0x295   : > { %s1434_s12 = smov %s974_s13  ;;  %s1435_s13 = smov %s978_s14 }
 0x296   : > { %s1436_s14 = smov %s1192_s20  ;;  %s1437_s15 = smov %s986_s16 }
 0x297   : > { %s1438_s16 = smov %s990_s17  ;;  %s1439_s17 = smov %s1124_s10 }
 0x298   :  { %19 = sbr.rel (!%p17_p12) target bundleno = 14 (0xe), region = 97 }
 0x29a   : > { %s1440_s20 = smov %s1432_s26 }
 0x29f   :  { %500 = vsyncpa [#allocation3], 1 }
 0x2a0   :  { %502 = vsyncpa [#allocation3 + $0x1], 1 }
 0x2a1   :  { %503 = vsyncpa [#allocation6], 1 }
 0x2a2   :  { %505 = vsyncpa [#allocation6 + $0x1], 1 }
 0x2a3   :  { %506 = vsyncpa [#allocation4], 1 }
 0x2a4   :  { %508 = vsyncpa [#allocation4 + $0x1], 1 }

</bundles_post_ra>
